<compile_context>
chip_gen: v7x
topology: tpu7x:2x2x1
jax: 0.10.0
libtpu: 0.0.40
codegen_flags: <defaults>
</compile_context>

<pallas_src>
import functools

import jax
import jax.numpy as jnp
from jax.experimental import pallas as pl
from jax.experimental.pallas import tpu as pltpu


def _round_up(x, m):
    return ((x + m - 1) // m) * m


# ------------------------------------------------------------------ kernel ---

def _make_mlp_kernel(num_layers):
    """Fused MLP kernel: ReLU on every layer except the last."""

    def kernel(x_ref, *refs):
        out_ref = refs[-1]
        wb_refs = refs[:-1]
        h = x_ref[...]                          # (tb, in_dim) f32
        for i in range(num_layers):
            w = wb_refs[2 * i][...]             # (in, out)  bf16
            b = wb_refs[2 * i + 1][...]         # (1, out)   f32
            # bf16 MXU inputs, f32 accumulation; elementwise stays f32
            # (also correct on v5e which has no bf16 VPU path).
            h = jnp.dot(h.astype(w.dtype), w,
                        preferred_element_type=jnp.float32) + b
            if i < num_layers - 1:
                h = jnp.maximum(h, 0.0)
        out_ref[...] = h.astype(out_ref.dtype)

    return kernel


# ----------------------------------------------------------------- wrapper ---

def _choose_tb(batch, tile_b):
    # Target ~4 grid steps (>=2 keeps both v7x TensorCores busy under
    # dimension_semantics=("parallel",)); cap the tile so the double-buffered
    # x/out tiles + intermediates stay well under scoped VMEM on all chips.
    tb = _round_up(-(-batch // 4), 8)           # round_up(cdiv(batch, 4), 8)
    return max(8, min(tb, tile_b))


@functools.partial(jax.jit, static_argnames=("tile_b",))
def f_network_forward(states, params, *, tile_b=4096):
    """states: (batch, input_dim) f32. params: dict w1,b1,...,wN,bN (w: (in,out))."""
    batch, in_dim = states.shape
    num_layers = len(params) // 2
    w_list = [params[f"w{i}"] for i in range(1, num_layers + 1)]
    b_list = [params[f"b{i}"] for i in range(1, num_layers + 1)]
    out_dim = w_list[-1].shape[1]               # true output width (lane-full-dim)

    tb = _choose_tb(batch, tile_b)
    grid = (pl.cdiv(batch, tb),)                # ragged last block handled by Pallas

    # Weights/biases: constant index_map -> loaded once, resident across steps.
    const = lambda a: pl.BlockSpec(a.shape, lambda b, _n=a.ndim: (0,) * _n)

    in_specs = [pl.BlockSpec((tb, in_dim), lambda b: (b, 0))]
    operands = [states]
    for w, bias in zip(w_list, b_list):
        in_specs += [const(w), const(bias)]
        operands += [w, bias]

    out = pl.pallas_call(
        _make_mlp_kernel(num_layers),
        out_shape=jax.ShapeDtypeStruct((batch, out_dim), jnp.float32),
        grid_spec=pltpu.PrefetchScalarGridSpec(
            num_scalar_prefetch=0,
            grid=grid,
            in_specs=in_specs,
            out_specs=pl.BlockSpec((tb, out_dim), lambda b: (b, 0)),
        ),
        compiler_params=pltpu.CompilerParams(
            dimension_semantics=("parallel",)),
    )(*operands)

    return out


# ---------------------------------------------------------- param creation ---

def init_f_network_params(key, parameterspec, template_num,
                          weight_dtype=jnp.bfloat16):
    """Params matching LinearModule.build_units with out_dim=template_num.

    Weights are stored pre-transposed as (in, out); bf16 for MXU inputs.
    Biases stay f32. No lane padding of the final layer: the output array's
    last dim equals template_num (full-array-dim BlockSpec exemption), which
    avoids 4x output write amplification and the wrapper-side slice copy.
    """
    layer_dims = [(parameterspec[i], parameterspec[i + 1])
                  for i in range(len(parameterspec) - 2)]
    layer_dims.append((parameterspec[-2], template_num))   # final linear

    params = {}
    for idx, (fan_in, fan_out) in enumerate(layer_dims, start=1):
        key, kw, kb = jax.random.split(key, 3)
        bound = 1.0 / (fan_in ** 0.5)        # torch.nn.Linear default init
        w = jax.random.uniform(kw, (fan_in, fan_out), jnp.float32,
                               minval=-bound, maxval=bound)
        b = jax.random.uniform(kb, (1, fan_out), jnp.float32,
                               minval=-bound, maxval=bound)
        params[f"w{idx}"] = w.astype(weight_dtype)   # bf16 MXU inputs
        params[f"b{idx}"] = b                        # bias kept in f32
    return params


# -------------------------------------------------------------- reference ---

def f_network_reference(states, params):
    """Pure-JAX reference using the exact same dtype handling as the kernel."""
    num_layers = len(params) // 2
    h = states
    for i in range(1, num_layers + 1):
        w, b = params[f"w{i}"], params[f"b{i}"]
        h = jnp.dot(h.astype(w.dtype), w, preferred_element_type=jnp.float32) + b
        if i < num_layers:
            h = jnp.maximum(h, 0.0)
    return h


# -------------------------------------------------------------------- main ---

if __name__ == "__main__":
    # Synthetic config: DEFAULT_MODEL_PARAMS['F_network'] = [64, 128, 128],
    #                   DEFAULT_MODEL_PARAMS['template_num'] = 32
    parameterspec = [64, 128, 128]
    template_num = 32

    key = jax.random.PRNGKey(0)
    key, kx = jax.random.split(key)
    params = init_f_network_params(key, parameterspec, template_num)

    # Small deterministic batch of ECFP state vectors.
    batch = 8
    states = jax.random.normal(kx, (batch, parameterspec[0]), jnp.float32)

    out = f_network_forward(states, params)
    out = jax.block_until_ready(out)
    ref = f_network_reference(states, params)
    assert out.shape == (batch, template_num)
    assert jnp.allclose(out, ref, atol=1e-2, rtol=1e-2), \
        float(jnp.max(jnp.abs(out - ref)))

    # Exercise the batch grid: multiple tiles + a ragged (masked) last block.
    batch2 = 300
    key, kx2 = jax.random.split(key)
    states2 = jax.random.normal(kx2, (batch2, parameterspec[0]), jnp.float32)
    out2 = jax.block_until_ready(
        f_network_forward(states2, params, tile_b=128))
    ref2 = f_network_reference(states2, params)
    assert out2.shape == (batch2, template_num)
    assert jnp.allclose(out2, ref2, atol=1e-2, rtol=1e-2), \
        float(jnp.max(jnp.abs(out2 - ref2)))

    print("KERNEL_OK")
</pallas_src>

<mosaic_0001>
module attributes {stable_mosaic.version = 11 : i64} {
  func.func @kernel(%arg0: i32, %arg1: memref<8x64xf32, #tpu.memory_space<vmem>>, %arg2: memref<64x128xbf16, #tpu.memory_space<vmem>>, %arg3: memref<1x128xf32, #tpu.memory_space<vmem>>, %arg4: memref<128x32xbf16, #tpu.memory_space<vmem>>, %arg5: memref<1x32xf32, #tpu.memory_space<vmem>>, %arg6: memref<8x32xf32, #tpu.memory_space<vmem>>) attributes {dimension_semantics = [#tpu.dimension_semantics<parallel>], iteration_bounds = array<i64: 1>, scalar_prefetch = 0 : i64, scratch_operands = 0 : i64, tpu.core_type = #tpu.core_type<tc>, window_params = [{transform_indices = @transform_0, window_bounds = array<i64: 8, 64>}, {pipeline_mode = #tpu.pipeline_mode<synchronous>, transform_indices = @transform_1, window_bounds = array<i64: 64, 128>}, {pipeline_mode = #tpu.pipeline_mode<synchronous>, transform_indices = @transform_2, window_bounds = array<i64: 1, 128>}, {pipeline_mode = #tpu.pipeline_mode<synchronous>, transform_indices = @transform_3, window_bounds = array<i64: 128, 32>}, {pipeline_mode = #tpu.pipeline_mode<synchronous>, transform_indices = @transform_4, window_bounds = array<i64: 1, 32>}, {transform_indices = @transform_5, window_bounds = array<i64: 8, 32>}]} {
    %c0 = arith.constant 0 : index
    %c0_0 = arith.constant 0 : index
    %0 = vector.load %arg1[%c0, %c0_0] : memref<8x64xf32, #tpu.memory_space<vmem>>, vector<8x64xf32>
    %c0_1 = arith.constant 0 : index
    %c0_2 = arith.constant 0 : index
    %1 = vector.load %arg2[%c0_1, %c0_2] : memref<64x128xbf16, #tpu.memory_space<vmem>>, vector<64x128xbf16>
    %c0_3 = arith.constant 0 : index
    %c0_4 = arith.constant 0 : index
    %2 = vector.load %arg3[%c0_3, %c0_4] : memref<1x128xf32, #tpu.memory_space<vmem>>, vector<1x128xf32>
    %3 = arith.truncf %0 : vector<8x64xf32> to vector<8x64xbf16>
    %cst = arith.constant dense<0.000000e+00> : vector<8x128xf32>
    %4 = tpu.matmul %3, %1, %cst {dimension_numbers = #tpu.dot_dimension_numbers<[1], [0], [0], [1], [0, 0, 1, 1], [], []>} : vector<8x64xbf16>, vector<64x128xbf16>, vector<8x128xf32> -> vector<8x128xf32>
    %5 = vector.broadcast %2 : vector<1x128xf32> to vector<8x128xf32>
    %6 = arith.addf %4, %5 : vector<8x128xf32>
    %cst_5 = arith.constant 0.000000e+00 : f32
    %7 = vector.broadcast %cst_5 : f32 to vector<8x128xf32>
    %8 = arith.maximumf %6, %7 : vector<8x128xf32>
    %c0_6 = arith.constant 0 : index
    %c0_7 = arith.constant 0 : index
    %9 = vector.load %arg4[%c0_6, %c0_7] : memref<128x32xbf16, #tpu.memory_space<vmem>>, vector<128x32xbf16>
    %c0_8 = arith.constant 0 : index
    %c0_9 = arith.constant 0 : index
    %10 = vector.load %arg5[%c0_8, %c0_9] : memref<1x32xf32, #tpu.memory_space<vmem>>, vector<1x32xf32>
    %11 = arith.truncf %8 : vector<8x128xf32> to vector<8x128xbf16>
    %cst_10 = arith.constant dense<0.000000e+00> : vector<8x32xf32>
    %12 = tpu.matmul %11, %9, %cst_10 {dimension_numbers = #tpu.dot_dimension_numbers<[1], [0], [0], [1], [0, 0, 1, 1], [], []>} : vector<8x128xbf16>, vector<128x32xbf16>, vector<8x32xf32> -> vector<8x32xf32>
    %13 = vector.broadcast %10 : vector<1x32xf32> to vector<8x32xf32>
    %14 = arith.addf %12, %13 : vector<8x32xf32>
    %c0_11 = arith.constant 0 : index
    %c0_12 = arith.constant 0 : index
    %15 = vector.load %arg6[%c0_11, %c0_12] : memref<8x32xf32, #tpu.memory_space<vmem>>, vector<8x32xf32>
    tpu.vector_store %arg6[%c0_11, %c0_12], %14 {strides = array<i32>} : memref<8x32xf32, #tpu.memory_space<vmem>>, vector<8x32xf32>,
    return
  }
  func.func @transform_0(%arg0: i32) -> (i32, i32) {
    %c0_i32 = arith.constant 0 : i32
    %c0_i32_0 = arith.constant 0 : i32
    return %arg0, %c0_i32 : i32, i32
  }
  func.func @transform_1(%arg0: i32) -> (i32, i32) {
    %c0_i32 = arith.constant 0 : i32
    %c0_i32_0 = arith.constant 0 : i32
    %c0_i32_1 = arith.constant 0 : i32
    return %c0_i32, %c0_i32_0 : i32, i32
  }
  func.func @transform_2(%arg0: i32) -> (i32, i32) {
    %c0_i32 = arith.constant 0 : i32
    %c0_i32_0 = arith.constant 0 : i32
    %c0_i32_1 = arith.constant 0 : i32
    return %c0_i32, %c0_i32_0 : i32, i32
  }
  func.func @transform_3(%arg0: i32) -> (i32, i32) {
    %c0_i32 = arith.constant 0 : i32
    %c0_i32_0 = arith.constant 0 : i32
    %c0_i32_1 = arith.constant 0 : i32
    return %c0_i32, %c0_i32_0 : i32, i32
  }
  func.func @transform_4(%arg0: i32) -> (i32, i32) {
    %c0_i32 = arith.constant 0 : i32
    %c0_i32_0 = arith.constant 0 : i32
    %c0_i32_1 = arith.constant 0 : i32
    return %c0_i32, %c0_i32_0 : i32, i32
  }
  func.func @transform_5(%arg0: i32) -> (i32, i32) {
    %c0_i32 = arith.constant 0 : i32
    %c0_i32_0 = arith.constant 0 : i32
    return %arg0, %c0_i32 : i32, i32
  }
}

</mosaic_0001>

<bundles_post_ra>
// kernel: f_network_forward.1
= control target key start
LH: loop header
LB: loop body
LE: loop exit
PB: predicated region body
PF: predicated region fallthrough
CT: control target
= control target key end

     0   :  { %v336_v1 = vmov 0.0   ;;  %vm337_vm0 = vmmov 0   ;;  %s426_s0 = inlined_call_operand.vmem [shape: f32[8,64], index: 0, kind: input, shape index: {}]   ;;  %s427_s1 = inlined_call_operand.vmem [shape: bf16[64,128], index: 1, kind: input, shape index: {}]   ;;  %s428_s2 = inlined_call_operand.vmem [shape: f32[1,128], index: 2, kind: input, shape index: {}]   ;;  %s429_s3 = inlined_call_operand.vmem [shape: bf16[128,32], index: 3, kind: input, shape index: {}]   ;;  %s430_s4 = inlined_call_operand.vmem [shape: f32[1,32], index: 4, kind: input, shape index: {}]   ;;  %s431_s5 = inlined_call_operand.hbm [shape: f32[8,32], index: 5, kind: output, shape index: {}]  }
   0x1   :  { %v300_v0 = vld [vmem:[%s427_s1] sm:$0xff]   ;;  %265 = vmatprep.subr.bf16.mxu0 %v336_v1  ;;  %277 = vmatprep.subr.bf16.mxu1 %v336_v1  ;;  %v301_v2 = vld [vmem:[%s427_s1 + $0x8] sm:$0xff]   ;;  %v302_v4 = vld [vmem:[%s427_s1 + $0x10] sm:$0xff]  }
   0x2   :  { %266 = vmatpush3.bf16.msra.mxu0 %v300_v0  ;;  %273 = vmatprep.mubr.msk.bf16.mxu0 %vm337_vm0, %v336_v1  ;;  %v304_v3 = vld [vmem:[%s429_s3] sm:$0xff]   ;;  %v305_v5 = vld [vmem:[%s429_s3 + $0x8] sm:$0xff]   ;;  %v303_v6 = vld [vmem:[%s427_s1 + $0x18] sm:$0xff]  }
   0x3   :  { %267 = vmatprep.subr.bf16.mxu0 %v336_v1  ;;  %293 = vmatprep.mubr.msk.bf16.mxu1 %vm337_vm0, %v336_v1  ;;  %v22_v7 = vld [vmem:[%s426_s0] sm:$0xff]  ;;  %v306_v8 = vld [vmem:[%s429_s3 + $0x10] sm:$0xff]  }
   0x4   :  { %278 = vmatpush3.bf16.msra.mxu1 %v304_v3 }
   0x5   :  { %279 = vmatprep.subr.bf16.mxu1 %v336_v1 }
   0x6   :  { %268 = vmatpush3.bf16.msra.mxu0 %v301_v2 }
   0x7   :  { %269 = vmatprep.subr.bf16.mxu0 %v336_v1 }
   0x8   :  { %280 = vmatpush3.bf16.msra.mxu1 %v305_v5 }
   0x9   :  { %281 = vmatprep.subr.bf16.mxu1 %v336_v1 }
   0xa   :  { %270 = vmatpush3.bf16.msra.mxu0 %v302_v4 }
   0xb   :  { %271 = vmatprep.subr.bf16.mxu0 %v336_v1 }
   0xc   :  { %10 = vsyncpa [#allocation3], 0  ;;  %v32_v9 = vpack.c.bf16 %v22_v7, %v22_v7  ;;  %vm63_vm1 = vcmask 523264   ;;  %282 = vmatpush3.bf16.msra.mxu1 %v306_v8  ;;  %v307_v10 = vld [vmem:[%s429_s3 + $0x18] sm:$0xff]   ;;  %v308_v11 = vld [vmem:[%s429_s3 + $0x20] sm:$0xff]   ;;  %s338_s21 = smov [#allocation2]  }
   0xd   :  { %283 = vmatprep.subr.bf16.mxu1 %v336_v1  ;;  %v309_v12 = vld [vmem:[%s429_s3 + $0x28] sm:$0xff]   ;;  %v310_v13 = vld [vmem:[%s429_s3 + $0x30] sm:$0xff]   ;;  %v311_v14 = vld [vmem:[%s429_s3 + $0x38] sm:$0xff]   ;;  %s228_s22 = sshll.u32 %s338_s21, 4  ;;  %vm220_vm2 = vcmask 261120   ;;  %s229_s22 = int_to_ptr.vmem [resolvable:$true] %s228_s22 }
   0xe   :  { %272 = vmatpush3.bf16.msra.mxu0 %v303_v6  ;;  %v236_v15 = vld [vmem:[%s428_s2] ss:$0 sm:$0xff]  ;;  %s312_s2 = scalar_lea.vmem %s229_s22, 128  ;;  %p317_p1 = scmp.lt.s32.totalorder %s229_s22, %s229_s22 }
   0xf   :  { %v242_v23 = vld [vmem:[%s430_s4] ss:$0 sm:$0xff]  ;;  %p313_p0 = scmp.ne.s32.totalorder %s229_s22, %s312_s2  ;;  %p318_p2 = scmp.lt.s32.totalorder %s312_s2, %s312_s2 }
  0x10   :  { %284 = vmatpush3.bf16.msra.mxu1 %v307_v10 }
  0x11   :  { %274 = vmatmul.mubr.msk.bf16.vlgmr.msra.gmra.mrb[0].mxu0 %vm63_vm1, %v32_v9  ;;  %285 = vmatprep.subr.bf16.mxu1 %v336_v1  ;;  %p319_p3 = por %p318_p2, %p317_p1 }
  0x13   :  { %p320_p4 = pnand %p319_p3, %p313_p0 }
  0x14   :  { %286 = vmatpush3.bf16.msra.mxu1 %v308_v11 }
  0x15   :  { %287 = vmatprep.subr.bf16.mxu1 %v336_v1 }
  0x18   :  { %288 = vmatpush3.bf16.msra.mxu1 %v309_v12 }
  0x19   :  { %289 = vmatprep.subr.bf16.mxu1 %v336_v1 }
  0x1c   :  { %290 = vmatpush3.bf16.msra.mxu1 %v310_v13 }
  0x1d   :  { %291 = vmatprep.subr.bf16.mxu1 %v336_v1 }
  0x20   :  { %292 = vmatpush3.bf16.msra.mxu1 %v311_v14 }
  0xe4   :  { %v101_v16 = vpop.f32.mrb[0].mxu0 }
  0xe5   :  { %v102_v17 = vadd.f32 %v236_v15, %v101_v16  ;;  %v275_v18 = vpop.f32.mrb[1].mxu0 }
  0xe6   :  { %v104_v19 = vpop.f32.mrb[2].mxu0 }
  0xe7   :  { %v107_v20 = vmax.f32 %v102_v17, 0.0  ;;  %v276_v21 = vpop.f32.mrb[3].mxu0 }
  0xe9   :  { %v125_v22 = vpack.c.bf16 %v107_v20, %v107_v20 }
  0xeb   :  { %294 = vmatmul.mubr.bf16.vlgmr.msra.gmra.mrb[0].mxu1 %v125_v22 }
 0x1be   :  { %v214_v24 = vpop.f32.mrb[0].mxu1 }
 0x1bf   :  { %v215_v25 = vadd.f32 %v242_v23, %v214_v24  ;;  %v295_v26 = vpop.f32.mrb[1].mxu1 }
 0x1c0   :  { %v217_v27 = vpop.f32.mrb[2].mxu1 }
 0x1c1   :  { %v296_v28 = vpop.f32.mrb[3].mxu1  ;;  %221 = vst.msk [vmem:[#allocation2] sm:$0xff] %vm220_vm2, %v215_v25 }
 0x1c2   :  { %323 = shalt.err (!%p320_p4)
}
 0x1c3   :  { %s324_s4 = scalar_lea.hbm %s431_s5, 128 }
 0x1c4   :  { %p325_p5 = scmp.ne.s32.totalorder %s431_s5, %s324_s4  ;;  %p328_p6 = scmp.lt.u32.totalorder %s324_s4, %s431_s5 }
 0x1c6   :  { %p330_p7 = pnand %p328_p6, %p325_p5 }
 0x1c8   :  { %333 = shalt.err (!%p330_p7)
}
 0x1c9   :  { %231 = dma.vmem_to_hbm [thread:$0]  %s229_s22, 128, %s431_s5, [#allocation3]  }
 0x1ca   :  { %334 = dma.done.wait [#allocation3], 128  }
 0x1cb   :  { %335 = vsyncadd [#allocation3], 4294967168 }
 0x1cc   :  { %235 = vsyncpa [#allocation3], 1 }

</bundles_post_ra>
